<compile_context>
chip_gen: v5e
topology: v5e:2x2
jax: 0.10.0
libtpu: 0.0.40
codegen_flags: <defaults>
</compile_context>

<pallas_src>
import jax
import jax.numpy as jnp
from jax.experimental import pallas as pl
from jax.experimental.pallas import tpu as pltpu

LAYERS = [2, 50, 50, 50, 50, 1]
FPAD = 64         # hidden width padded to 64 sublanes (was 128 lanes in v2)
LANE = 128        # batch-lane quantum
TB_MAX = 2048     # max batch tile (lanes); sweep 1024-4096 if desired


def _ceil_to(v, m):
    return ((v + m - 1) // m) * m


def _mlp_kernel(x_ref, w0t_ref, bh_ref, wht_ref, w4_ref, b4_ref, o_ref):
    """Full 5-layer forward for one batch tile, transposed (feature-major) layout.

    x_ref   : (2, TB)          input coordinates, batch in lanes
    w0t_ref : (FPAD, 2)        layer-0 weight, transposed + zero padded
    bh_ref  : (4, FPAD, 1)     biases of the four hidden layers (column vectors)
    wht_ref : (3, FPAD, FPAD)  weights of hidden layers 1..3, transposed + zero padded
    w4_ref  : (FPAD, 1)        output weight column, zero padded
    b4_ref  : (1, 1) in SMEM   output bias scalar
    o_ref   : (1, TB)          lane-dense output row
    """
    x = x_ref[...]                                   # (2, TB)
    w0t = w0t_ref[...]                               # (FPAD, 2)

    # Layer 0 on the VPU: outer-product broadcasts, no K=2 MXU matmul.
    # (FPAD,1) lane-broadcast x (1,TB) sublane-broadcast -> (FPAD, TB)
    a = jnp.tanh(w0t[:, 0:1] * x[0:1, :]
                 + w0t[:, 1:2] * x[1:2, :]
                 + bh_ref[0])

    # Hidden layers 1..3: (FPAD,FPAD) @ (FPAD,TB) MXU matmuls, f32 accumulation.
    # If the packed weights are bf16 (opt-in), the activation operand is cast to match.
    for l in range(3):
        a = jnp.tanh(
            jnp.dot(wht_ref[l], a.astype(wht_ref.dtype),
                    preferred_element_type=jnp.float32)
            + bh_ref[l + 1])

    # Output layer: VPU multiply + sublane (XLU) reduce against the single weight column.
    out = jnp.sum(a * w4_ref[...], axis=0, keepdims=True) + b4_ref[0, 0]
    o_ref[...] = out.astype(o_ref.dtype)


def pack_params(params, matmul_dtype=jnp.float32):
    """Transpose / zero-pad / stack the per-layer (W, b) params once, outside jit.

    matmul_dtype=jnp.bfloat16 is an explicit opt-in for the hidden-layer MXU operands
    (f32 accumulation is kept); it changes results beyond the 1e-4 reference check.
    """
    assert len(params) == len(LAYERS) - 1
    f32 = jnp.float32

    w0, b0 = params[0]                                     # (2, 50), (50,)
    w0t = jnp.zeros((FPAD, LAYERS[0]), f32).at[:LAYERS[1], :].set(w0.astype(f32).T)

    wht = jnp.zeros((3, FPAD, FPAD), f32)
    bh = jnp.zeros((4, FPAD, 1), f32)
    bh = bh.at[0, :LAYERS[1], 0].set(b0.astype(f32))
    for l in range(1, 4):
        w, b = params[l]                                   # (50, 50), (50,)
        wht = wht.at[l - 1, :LAYERS[l + 1], :LAYERS[l]].set(w.astype(f32).T)
        bh = bh.at[l, :LAYERS[l + 1], 0].set(b.astype(f32))

    w4, b4 = params[4]                                     # (50, 1), (1,)
    w4col = jnp.zeros((FPAD, 1), f32).at[:LAYERS[4], 0].set(w4[:, 0].astype(f32))
    b4s = jnp.asarray(b4, f32).reshape(1, 1)

    return (w0t, bh, wht.astype(matmul_dtype), w4col, b4s)


@jax.jit
def deep_pinn_forward(x, packed):
    """x: (N, 2) float32; packed = pack_params(params).  Returns (N, 1) float32,
    identical semantics to DeepPINN.forward."""
    w0t, bh, wht, w4col, b4s = packed
    n, fin = x.shape
    assert fin == LAYERS[0]

    # Batch tile selection: lane quantum 128, up to TB_MAX lanes per tile, tile count
    # derived from N (minimizes padding waste).  For N > one tile, force >= 2 (even)
    # grid steps so both v7x TensorCores stay busy; harmless on single-TC v5e/v6e.
    if n <= LANE:
        num_tiles = 1
    else:
        num_tiles = max(2, -(-n // TB_MAX))
        num_tiles += num_tiles % 2
    tb = _ceil_to(-(-n // num_tiles), LANE)
    n_pad = tb * num_tiles

    # Transpose to batch-in-lanes layout and zero-pad the batch lanes.
    xt = jnp.zeros((LAYERS[0], n_pad), jnp.float32).at[:, :n].set(x.astype(jnp.float32).T)

    out = pl.pallas_call(
        _mlp_kernel,
        out_shape=jax.ShapeDtypeStruct((1, n_pad), jnp.float32),
        grid_spec=pltpu.PrefetchScalarGridSpec(
            num_scalar_prefetch=0,
            grid=(num_tiles,),
            in_specs=[
                pl.BlockSpec((LAYERS[0], tb), lambda i: (0, i)),        # x (2, tb), lane-dense
                pl.BlockSpec((FPAD, LAYERS[0]), lambda i: (0, 0)),      # layer-0 weight^T
                pl.BlockSpec((4, FPAD, 1), lambda i: (0, 0, 0)),        # hidden biases
                pl.BlockSpec((3, FPAD, FPAD), lambda i: (0, 0, 0)),     # hidden weights^T
                pl.BlockSpec((FPAD, 1), lambda i: (0, 0)),              # output weight column
                pl.BlockSpec(memory_space=pltpu.MemorySpace.SMEM),      # output bias scalar
            ],
            out_specs=pl.BlockSpec((1, tb), lambda i: (0, i)),          # lane-dense row
        ),
        compiler_params=pltpu.CompilerParams(
            dimension_semantics=("parallel",)),   # megacore / v7x two-TC sharding
    )(xt, w0t, bh, wht, w4col, b4s)

    return out[0, :n].reshape(n, 1)


def init_params(key):
    """Xavier-normal weights with tanh gain (5/3), zero biases — matches
    nn.init.xavier_normal_(gain=calculate_gain('tanh')) / zeros_."""
    gain = 5.0 / 3.0
    params = []
    for i in range(len(LAYERS) - 1):
        key, sub = jax.random.split(key)
        fan_in, fan_out = LAYERS[i], LAYERS[i + 1]
        std = gain * jnp.sqrt(2.0 / (fan_in + fan_out))
        w = std * jax.random.normal(sub, (fan_in, fan_out), jnp.float32)
        b = jnp.zeros((fan_out,), jnp.float32)
        params.append((w, b))
    return params


def reference_forward(x, params):
    a = x
    for (w, b) in params[:-1]:
        a = jnp.tanh(a @ w + b)
    w, b = params[-1]
    return a @ w + b


if __name__ == "__main__":
    key = jax.random.PRNGKey(0)
    params = init_params(key)
    packed = pack_params(params)                 # f32 default; bf16 matmul is opt-in

    # PINN-style collocation points: (x, t) coordinate pairs.
    nx = 64
    xs = jnp.linspace(-1.0, 1.0, nx, dtype=jnp.float32)
    ts = jnp.linspace(0.0, 1.0, nx, dtype=jnp.float32)
    pts_small = jnp.stack([xs, ts], axis=-1)                    # (64, 2)   -> 1 grid step

    xg, tg = jnp.meshgrid(xs, ts, indexing="ij")
    pts_big = jnp.stack([xg.ravel(), tg.ravel()], axis=-1)      # (4096, 2) -> 2 grid steps

    for pts in (pts_small, pts_big):
        out = jax.block_until_ready(deep_pinn_forward(pts, packed))
        ref = reference_forward(pts, params)
        assert out.shape == (pts.shape[0], 1)
        assert jnp.allclose(out, ref, atol=1e-4, rtol=1e-4), "mismatch vs pure-JAX reference"

    print("KERNEL_OK")
</pallas_src>

<mosaic_0001>
module attributes {stable_mosaic.version = 11 : i64} {
  func.func @_mlp_kernel(%arg0: i32, %arg1: memref<2x128xf32, #tpu.memory_space<vmem>>, %arg2: memref<64x2xf32, #tpu.memory_space<vmem>>, %arg3: memref<4x64x1xf32, #tpu.memory_space<vmem>>, %arg4: memref<3x64x64xf32, #tpu.memory_space<vmem>>, %arg5: memref<64x1xf32, #tpu.memory_space<vmem>>, %arg6: memref<1x1xf32, #tpu.memory_space<smem>>, %arg7: memref<1x128xf32, #tpu.memory_space<vmem>>) attributes {dimension_semantics = [#tpu.dimension_semantics<parallel>], iteration_bounds = array<i64: 1>, scalar_prefetch = 0 : i64, scratch_operands = 0 : i64, tpu.core_type = #tpu.core_type<tc>, window_params = [{transform_indices = @transform_0, window_bounds = array<i64: 2, 128>}, {pipeline_mode = #tpu.pipeline_mode<synchronous>, transform_indices = @transform_1, window_bounds = array<i64: 64, 2>}, {pipeline_mode = #tpu.pipeline_mode<synchronous>, transform_indices = @transform_2, window_bounds = array<i64: 4, 64, 1>}, {pipeline_mode = #tpu.pipeline_mode<synchronous>, transform_indices = @transform_3, window_bounds = array<i64: 3, 64, 64>}, {pipeline_mode = #tpu.pipeline_mode<synchronous>, transform_indices = @transform_4, window_bounds = array<i64: 64, 1>}, {transform_indices = @transform_5, window_bounds = array<i64: 1, 1>}, {transform_indices = @transform_6, window_bounds = array<i64: 1, 128>}]} {
    %c0 = arith.constant 0 : index
    %c0_0 = arith.constant 0 : index
    %0 = vector.load %arg1[%c0, %c0_0] : memref<2x128xf32, #tpu.memory_space<vmem>>, vector<2x128xf32>
    %c0_1 = arith.constant 0 : index
    %c0_2 = arith.constant 0 : index
    %1 = vector.load %arg2[%c0_1, %c0_2] : memref<64x2xf32, #tpu.memory_space<vmem>>, vector<64x2xf32>
    %2 = vector.extract_strided_slice %1 {offsets = [0, 0], sizes = [64, 1], strides = [1, 1]} : vector<64x2xf32> to vector<64x1xf32>
    %3 = vector.extract_strided_slice %0 {offsets = [0, 0], sizes = [1, 128], strides = [1, 1]} : vector<2x128xf32> to vector<1x128xf32>
    %4 = vector.broadcast %2 : vector<64x1xf32> to vector<64x128xf32>
    %5 = vector.broadcast %3 : vector<1x128xf32> to vector<64x128xf32>
    %6 = arith.mulf %4, %5 : vector<64x128xf32>
    %7 = vector.extract_strided_slice %1 {offsets = [0, 1], sizes = [64, 1], strides = [1, 1]} : vector<64x2xf32> to vector<64x1xf32>
    %8 = vector.extract_strided_slice %0 {offsets = [1, 0], sizes = [1, 128], strides = [1, 1]} : vector<2x128xf32> to vector<1x128xf32>
    %9 = vector.broadcast %7 : vector<64x1xf32> to vector<64x128xf32>
    %10 = vector.broadcast %8 : vector<1x128xf32> to vector<64x128xf32>
    %11 = arith.mulf %9, %10 : vector<64x128xf32>
    %12 = arith.addf %6, %11 : vector<64x128xf32>
    %c0_3 = arith.constant 0 : index
    %c0_4 = arith.constant 0 : index
    %c0_5 = arith.constant 0 : index
    %13 = vector.load %arg3[%c0_3, %c0_4, %c0_5] : memref<4x64x1xf32, #tpu.memory_space<vmem>>, vector<1x64x1xf32>
    %14 = vector.shape_cast %13 : vector<1x64x1xf32> to vector<64x1xf32>
    %15 = vector.broadcast %14 : vector<64x1xf32> to vector<64x128xf32>
    %16 = arith.addf %12, %15 : vector<64x128xf32>
    %17 = math.tanh %16 : vector<64x128xf32>
    %c0_6 = arith.constant 0 : index
    %c0_7 = arith.constant 0 : index
    %c0_8 = arith.constant 0 : index
    %18 = vector.load %arg4[%c0_6, %c0_7, %c0_8] : memref<3x64x64xf32, #tpu.memory_space<vmem>>, vector<1x64x64xf32>
    %19 = vector.shape_cast %18 : vector<1x64x64xf32> to vector<64x64xf32>
    %cst = arith.constant dense<0.000000e+00> : vector<64x128xf32>
    %20 = tpu.matmul %19, %17, %cst {dimension_numbers = #tpu.dot_dimension_numbers<[1], [0], [0], [1], [0, 0, 1, 1], [], []>} : vector<64x64xf32>, vector<64x128xf32>, vector<64x128xf32> -> vector<64x128xf32>
    %c1 = arith.constant 1 : index
    %c0_9 = arith.constant 0 : index
    %c0_10 = arith.constant 0 : index
    %21 = vector.load %arg3[%c1, %c0_9, %c0_10] : memref<4x64x1xf32, #tpu.memory_space<vmem>>, vector<1x64x1xf32>
    %22 = vector.shape_cast %21 : vector<1x64x1xf32> to vector<64x1xf32>
    %23 = vector.broadcast %22 : vector<64x1xf32> to vector<64x128xf32>
    %24 = arith.addf %20, %23 : vector<64x128xf32>
    %25 = math.tanh %24 : vector<64x128xf32>
    %c1_11 = arith.constant 1 : index
    %c0_12 = arith.constant 0 : index
    %c0_13 = arith.constant 0 : index
    %26 = vector.load %arg4[%c1_11, %c0_12, %c0_13] : memref<3x64x64xf32, #tpu.memory_space<vmem>>, vector<1x64x64xf32>
    %27 = vector.shape_cast %26 : vector<1x64x64xf32> to vector<64x64xf32>
    %cst_14 = arith.constant dense<0.000000e+00> : vector<64x128xf32>
    %28 = tpu.matmul %27, %25, %cst_14 {dimension_numbers = #tpu.dot_dimension_numbers<[1], [0], [0], [1], [0, 0, 1, 1], [], []>} : vector<64x64xf32>, vector<64x128xf32>, vector<64x128xf32> -> vector<64x128xf32>
    %c2 = arith.constant 2 : index
    %c0_15 = arith.constant 0 : index
    %c0_16 = arith.constant 0 : index
    %29 = vector.load %arg3[%c2, %c0_15, %c0_16] : memref<4x64x1xf32, #tpu.memory_space<vmem>>, vector<1x64x1xf32>
    %30 = vector.shape_cast %29 : vector<1x64x1xf32> to vector<64x1xf32>
    %31 = vector.broadcast %30 : vector<64x1xf32> to vector<64x128xf32>
    %32 = arith.addf %28, %31 : vector<64x128xf32>
    %33 = math.tanh %32 : vector<64x128xf32>
    %c2_17 = arith.constant 2 : index
    %c0_18 = arith.constant 0 : index
    %c0_19 = arith.constant 0 : index
    %34 = vector.load %arg4[%c2_17, %c0_18, %c0_19] : memref<3x64x64xf32, #tpu.memory_space<vmem>>, vector<1x64x64xf32>
    %35 = vector.shape_cast %34 : vector<1x64x64xf32> to vector<64x64xf32>
    %cst_20 = arith.constant dense<0.000000e+00> : vector<64x128xf32>
    %36 = tpu.matmul %35, %33, %cst_20 {dimension_numbers = #tpu.dot_dimension_numbers<[1], [0], [0], [1], [0, 0, 1, 1], [], []>} : vector<64x64xf32>, vector<64x128xf32>, vector<64x128xf32> -> vector<64x128xf32>
    %c3 = arith.constant 3 : index
    %c0_21 = arith.constant 0 : index
    %c0_22 = arith.constant 0 : index
    %37 = vector.load %arg3[%c3, %c0_21, %c0_22] : memref<4x64x1xf32, #tpu.memory_space<vmem>>, vector<1x64x1xf32>
    %38 = vector.shape_cast %37 : vector<1x64x1xf32> to vector<64x1xf32>
    %39 = vector.broadcast %38 : vector<64x1xf32> to vector<64x128xf32>
    %40 = arith.addf %36, %39 : vector<64x128xf32>
    %41 = math.tanh %40 : vector<64x128xf32>
    %c0_23 = arith.constant 0 : index
    %c0_24 = arith.constant 0 : index
    %42 = vector.load %arg5[%c0_23, %c0_24] : memref<64x1xf32, #tpu.memory_space<vmem>>, vector<64x1xf32>
    %43 = vector.broadcast %42 : vector<64x1xf32> to vector<64x128xf32>
    %44 = arith.mulf %41, %43 : vector<64x128xf32>
    %cst_25 = arith.constant dense<0.000000e+00> : vector<128xf32>
    %45 = vector.multi_reduction <add>, %44, %cst_25 [0] : vector<64x128xf32> to vector<128xf32>
    %46 = vector.shape_cast %45 : vector<128xf32> to vector<1x128xf32>
    %c0_26 = arith.constant 0 : index
    %c0_27 = arith.constant 0 : index
    %47 = memref.load %arg6[%c0_26, %c0_27] : memref<1x1xf32, #tpu.memory_space<smem>>
    %48 = vector.broadcast %47 : f32 to vector<1x128xf32>
    %49 = arith.addf %46, %48 : vector<1x128xf32>
    %c0_28 = arith.constant 0 : index
    %c0_29 = arith.constant 0 : index
    %50 = vector.load %arg7[%c0_28, %c0_29] : memref<1x128xf32, #tpu.memory_space<vmem>>, vector<1x128xf32>
    tpu.vector_store %arg7[%c0_28, %c0_29], %49 {strides = array<i32>} : memref<1x128xf32, #tpu.memory_space<vmem>>, vector<1x128xf32>,
    return
  }
  func.func @transform_0(%arg0: i32) -> (i32, i32) {
    %c0_i32 = arith.constant 0 : i32
    %c0_i32_0 = arith.constant 0 : i32
    return %c0_i32, %arg0 : i32, i32
  }
  func.func @transform_1(%arg0: i32) -> (i32, i32) {
    %c0_i32 = arith.constant 0 : i32
    %c0_i32_0 = arith.constant 0 : i32
    %c0_i32_1 = arith.constant 0 : i32
    return %c0_i32, %c0_i32_0 : i32, i32
  }
  func.func @transform_2(%arg0: i32) -> (i32, i32, i32) {
    %c0_i32 = arith.constant 0 : i32
    %c0_i32_0 = arith.constant 0 : i32
    %c0_i32_1 = arith.constant 0 : i32
    %c0_i32_2 = arith.constant 0 : i32
    return %c0_i32, %c0_i32_0, %c0_i32_1 : i32, i32, i32
  }
  func.func @transform_3(%arg0: i32) -> (i32, i32, i32) {
    %c0_i32 = arith.constant 0 : i32
    %c0_i32_0 = arith.constant 0 : i32
    %c0_i32_1 = arith.constant 0 : i32
    %c0_i32_2 = arith.constant 0 : i32
    return %c0_i32, %c0_i32_0, %c0_i32_1 : i32, i32, i32
  }
  func.func @transform_4(%arg0: i32) -> (i32, i32) {
    %c0_i32 = arith.constant 0 : i32
    %c0_i32_0 = arith.constant 0 : i32
    %c0_i32_1 = arith.constant 0 : i32
    return %c0_i32, %c0_i32_0 : i32, i32
  }
  func.func @transform_5(%arg0: i32) -> (i32, i32) {
    %c0_i32 = arith.constant 0 : i32
    %c0_i32_0 = arith.constant 0 : i32
    %c0_i32_1 = arith.constant 0 : i32
    return %c0_i32, %c0_i32_0 : i32, i32
  }
  func.func @transform_6(%arg0: i32) -> (i32, i32) {
    %c0_i32 = arith.constant 0 : i32
    %c0_i32_0 = arith.constant 0 : i32
    return %c0_i32, %arg0 : i32, i32
  }
}

</mosaic_0001>

<bundles_post_ra>
// kernel: deep_pinn_forward.1
= control target key start
LH: loop header
LB: loop body
LE: loop exit
PB: predicated region body
PF: predicated region fallthrough
CT: control target
= control target key end

     0   :  { %v828_v0 = vmov 0   ;;  %v829_v4 = vmov 1   ;;  %vm252_vm0 = vcmask 523264   ;;  %s1134_s1 = inlined_call_operand.vmem [shape: f32[64,2], index: 1, kind: input, shape index: {}]   ;;  %s1135_s2 = inlined_call_operand.vmem [shape: f32[4,64,1], index: 2, kind: input, shape index: {}]   ;;  %s1136_s4 = inlined_call_operand.vmem [shape: f32[64,1], index: 4, kind: input, shape index: {}]   ;;  %s1137_s0 = inlined_call_operand.vmem [shape: f32[2,128], index: 0, kind: input, shape index: {}]   ;;  %s1138_s3 = inlined_call_operand.vmem [shape: f32[3,64,64], index: 3, kind: input, shape index: {}]   ;;  %s1139_s5 = inlined_call_operand.<no memory space> [shape: f32[1,1], index: 5, kind: input, shape index: {}]   ;;  %s1140_s6 = inlined_call_operand.vmem [shape: f32[1,128], index: 6, kind: output, shape index: {}]  }
   0x1   :  { %759 = vset.pattern.permute.xlu2 %v828_v0  ;;  %757 = vset.pattern.permute.xlu1 %v828_v0  ;;  %v32_v1 = vld [vmem:[%s1134_s1 + $0x38] sm:$0xff]  ;;  %v31_v2 = vld [vmem:[%s1134_s1 + $0x30] sm:$0xff]  ;;  %v30_v3 = vld [vmem:[%s1134_s1 + $0x28] sm:$0xff] }
   0x2   :  { %755 = vset.pattern.permute.xlu0 %v828_v0  ;;  %65 = vperm.xlu1 %757, %v31_v2   ;;  %v29_v5 = vld [vmem:[%s1134_s1 + $0x20] sm:$0xff]  ;;  %v138_v6 = vld [vmem:[%s1135_s2 + $0x38] sm:$0xff]  ;;  %v137_v8 = vld [vmem:[%s1135_s2 + $0x30] sm:$0xff] }
   0x3   :  { %70 = vperm.xlu0 %755, %v32_v1   ;;  %60 = vperm.xlu2 %759, %v30_v3   ;;  %v28_v7 = vld [vmem:[%s1134_s1 + $0x18] sm:$0xff]  ;;  %v27_v9 = vld [vmem:[%s1134_s1 + $0x10] sm:$0xff]  ;;  %v136_v10 = vld [vmem:[%s1135_s2 + $0x28] sm:$0xff] }
   0x4   :  { %v26_v11 = vld [vmem:[%s1134_s1 + $0x8] sm:$0xff]  ;;  %v135_v12 = vld [vmem:[%s1135_s2 + $0x20] sm:$0xff]  ;;  %v134_v14 = vld [vmem:[%s1135_s2 + $0x18] sm:$0xff] }
   0x5   :  { %v25_v13 = vld [vmem:[%s1134_s1] sm:$0xff]  ;;  %v133_v15 = vld [vmem:[%s1135_s2 + $0x10] sm:$0xff]  ;;  %v132_v17 = vld [vmem:[%s1135_s2 + $0x8] sm:$0xff] }
   0x6   :  { %v131_v16 = vld [vmem:[%s1135_s2] sm:$0xff]  ;;  %v672_v18 = vld [vmem:[%s1135_s2 + $0x78] sm:$0xff]  ;;  %v671_v20 = vld [vmem:[%s1135_s2 + $0x70] sm:$0xff] }
   0x7   :  { %v668_v19 = vld [vmem:[%s1135_s2 + $0x58] sm:$0xff]  ;;  %v670_v21 = vld [vmem:[%s1135_s2 + $0x68] sm:$0xff]  ;;  %v665_v22 = vld [vmem:[%s1135_s2 + $0x40] sm:$0xff] }
   0x8   :  { %v669_v23 = vld [vmem:[%s1135_s2 + $0x60] sm:$0xff]  ;;  %v667_v24 = vld [vmem:[%s1135_s2 + $0x50] sm:$0xff]  ;;  %v694_v25 = vld [vmem:[%s1135_s2 + $0xa8] sm:$0xff] }
   0x9   :  { %v666_v26 = vld [vmem:[%s1135_s2 + $0x48] sm:$0xff]  ;;  %v696_v27 = vld [vmem:[%s1135_s2 + $0xb8] sm:$0xff]  ;;  %v691_v28 = vld [vmem:[%s1135_s2 + $0x90] sm:$0xff] }
   0xa   :  { %758 = vset.pattern.permute.xlu1 %v829_v4  ;;  %v695_v29 = vld [vmem:[%s1135_s2 + $0xb0] sm:$0xff]  ;;  %v693_v30 = vld [vmem:[%s1135_s2 + $0xa0] sm:$0xff]  ;;  %v692_v32 = vld [vmem:[%s1135_s2 + $0x98] sm:$0xff] }
   0xb   :  { %756 = vset.pattern.permute.xlu0 %v829_v4  ;;  %760 = vset.pattern.permute.xlu2 %v829_v4  ;;  %v713_v31 = vld [vmem:[%s1135_s2 + $0xc0] sm:$0xff]  ;;  %v690_v34 = vld [vmem:[%s1135_s2 + $0x88] sm:$0xff]  ;;  %v716_v35 = vld [vmem:[%s1135_s2 + $0xd8] sm:$0xff] }
   0xc   :  { %111 = vperm.xlu0 %756, %v32_v1   ;;  %107 = vperm.xlu1 %758, %v31_v2   ;;  %v689_v36 = vld [vmem:[%s1135_s2 + $0x80] sm:$0xff]  ;;  %v714_v38 = vld [vmem:[%s1135_s2 + $0xc8] sm:$0xff]  ;;  %v715_v40 = vld [vmem:[%s1135_s2 + $0xd0] sm:$0xff] }
   0xd   :  { %103 = vperm.xlu2 %760, %v30_v3   ;;  %v588_v39 = vld [vmem:[%s1136_s4] sm:$0xff]  ;;  %v590_v44 = vld [vmem:[%s1136_s4 + $0x10] sm:$0xff]  ;;  %v718_v45 = vld [vmem:[%s1135_s2 + $0xe8] sm:$0xff] }
   0xe   :  { %v717_v43 = vld [vmem:[%s1135_s2 + $0xe0] sm:$0xff]  ;;  %v589_v53 = vld [vmem:[%s1136_s4 + $0x8] sm:$0xff]  ;;  %v719_v55 = vld [vmem:[%s1135_s2 + $0xf0] sm:$0xff] }
   0xf   :  { %v24_v49 = vld [vmem:[%s1137_s0] sm:$0x3]  ;;  %v720_v63 = vld [vmem:[%s1135_s2 + $0xf8] sm:$0xff] }
  0x10   :  { %v988_v50 = vperm.slane %v24_v49, 1  ;;  %v990_v51 = vperm.slane %v24_v49, 0  ;;  %v592_v54 = vld [vmem:[%s1136_s4 + $0x20] sm:$0xff]  ;;  %v591_v1 = vld [vmem:[%s1136_s4 + $0x18] sm:$0xff] }
  0x14   :  { %761 = vset.pattern.permute.xlu1 %v828_v0  ;;  %99 = vperm.xlu0 %756, %v29_v5  }
  0x15   :  { %762 = vset.pattern.permute.xlu2 %v828_v0  ;;  %176 = vperm.xlu1 %761, %v138_v6  }
  0x16   :  { %55 = vperm.xlu2 %762, %v29_v5  }
  0x1c   :  { %95 = vperm.xlu0 %756, %v28_v7  }
  0x1d   :  { %171 = vperm.xlu1 %761, %v137_v8  }
  0x1e   :  { %50 = vperm.xlu2 %762, %v28_v7  }
  0x24   :  { %91 = vperm.xlu0 %756, %v27_v9  }
  0x25   :  { %166 = vperm.xlu1 %761, %v136_v10  }
  0x26   :  { %45 = vperm.xlu2 %762, %v27_v9  }
  0x2c   :  { %87 = vperm.xlu0 %756, %v26_v11  }
  0x2d   :  { %161 = vperm.xlu1 %761, %v135_v12   ;;  %v594_v12 = vld [vmem:[%s1136_s4 + $0x30] sm:$0xff] }
  0x2e   :  { %40 = vperm.xlu2 %762, %v26_v11   ;;  %v593_v11 = vld [vmem:[%s1136_s4 + $0x28] sm:$0xff] }
  0x34   :  { %83 = vperm.xlu0 %756, %v25_v13  }
  0x35   :  { %156 = vperm.xlu1 %761, %v134_v14  }
  0x36   :  { %35 = vperm.xlu2 %762, %v25_v13  }
  0x3c   :  { %763 = vset.pattern.permute.xlu0 %v828_v0  ;;  %v595_v0 = vld [vmem:[%s1136_s4 + $0x38] sm:$0xff] }
  0x3d   :  { %151 = vperm.xlu1 %761, %v133_v15   ;;  %141 = vperm.xlu0 %763, %v131_v16  }
  0x3e   :  { %146 = vperm.xlu2 %762, %v132_v17  }
  0x45   :  { %249 = vperm.xlu1 %761, %v672_v18   ;;  %229 = vperm.xlu0 %763, %v668_v19  }
  0x46   :  { %244 = vperm.xlu2 %762, %v671_v20  }
  0x4d   :  { %239 = vperm.xlu1 %761, %v670_v21   ;;  %214 = vperm.xlu0 %763, %v665_v22  }
  0x4e   :  { %234 = vperm.xlu2 %762, %v669_v23  }
  0x55   :  { %224 = vperm.xlu1 %761, %v667_v24   ;;  %371 = vperm.xlu0 %763, %v694_v25  }
  0x56   :  { %219 = vperm.xlu2 %762, %v666_v26  }
  0x5d   :  { %381 = vperm.xlu1 %761, %v696_v27   ;;  %356 = vperm.xlu0 %763, %v691_v28   ;;  %v61_v33 = vpop.permute.xlu2 %60 }
  0x5e   :  { %376 = vperm.xlu2 %762, %v695_v29   ;;  %v79_v9 = vmul.f32 %v990_v51, %v61_v33 }
  0x65   :  { %366 = vperm.xlu1 %761, %v693_v30   ;;  %477 = vperm.xlu0 %763, %v713_v31  }
  0x66   :  { %361 = vperm.xlu2 %762, %v692_v32  }
  0x67   :  { %v104_v37 = vpop.permute.xlu2 %103 }
  0x68   :  { %v120_v10 = vmul.f32 %v988_v50, %v104_v37 }
  0x6a   :  { %v128_v14 = vadd.f32 %v120_v10, %v79_v9 }
  0x6d   :  { %351 = vperm.xlu1 %761, %v690_v34   ;;  %492 = vperm.xlu0 %763, %v716_v35  }
  0x6e   :  { %346 = vperm.xlu2 %762, %v689_v36  }
  0x70   :  { %v56_v46 = vpop.permute.xlu2 %55 }
  0x71   :  { %v78_v18 = vmul.f32 %v990_v51, %v56_v46 }
  0x74   :  { %v66_v41 = vpop.permute.xlu1 %65 }
  0x75   :  { %482 = vperm.xlu1 %761, %v714_v38   ;;  %598 = vperm.xlu0 %763, %v588_v39   ;;  %v71_v42 = vpop.permute.xlu0 %70  ;;  %v80_v2 = vmul.f32 %v990_v51, %v66_v41 }
  0x76   :  { %487 = vperm.xlu2 %762, %v715_v40   ;;  %v81_v56 = vmul.f32 %v990_v51, %v71_v42 }
  0x78   :  { %v51_v57 = vpop.permute.xlu2 %50 }
  0x79   :  { %v77_v27 = vmul.f32 %v990_v51, %v51_v57  ;;  %v197_v57 = vld [vmem:[%s1138_s3 + $0x10] sm:$0xff] }
  0x7d   :  { %497 = vperm.xlu1 %761, %v717_v43   ;;  %608 = vperm.xlu0 %763, %v590_v44  }
  0x7e   :  { %502 = vperm.xlu2 %762, %v718_v45   ;;  %v112_v47 = vpop.permute.xlu0 %111  ;;  %v108_v48 = vpop.permute.xlu1 %107 }
  0x7f   :  { %v122_v52 = vmul.f32 %v988_v50, %v112_v47  ;;  %v121_v62 = vmul.f32 %v988_v50, %v108_v48 }
  0x80   :  { %v46_v7 = vpop.permute.xlu2 %45 }
  0x81   :  { %v130_v59 = vadd.f32 %v122_v52, %v81_v56  ;;  %v129_v4 = vadd.f32 %v121_v62, %v80_v2  ;;  %v76_v37 = vmul.f32 %v990_v51, %v46_v7  ;;  %v202_v56 = vld [vmem:[%s1138_s3 + $0x38] sm:$0xff] }
  0x85   :  { %603 = vperm.xlu1 %761, %v589_v53   ;;  %618 = vperm.xlu0 %763, %v592_v54   ;;  %v201_v53 = vld [vmem:[%s1138_s3 + $0x30] sm:$0xff] }
  0x86   :  { %507 = vperm.xlu2 %762, %v719_v55   ;;  %v100_v58 = vpop.permute.xlu0 %99  ;;  %v196_v55 = vld [vmem:[%s1138_s3 + $0x8] sm:$0xff] }
  0x87   :  { %v177_v60 = vpop.permute.xlu1 %176  ;;  %v119_v19 = vmul.f32 %v988_v50, %v100_v58  ;;  %v198_v58 = vld [vmem:[%s1138_s3 + $0x18] sm:$0xff] }
  0x88   :  { %v186_v61 = vadd.f32 %v177_v60, %v130_v59  ;;  %v41_v20 = vpop.permute.xlu2 %40  ;;  %v199_v59 = vld [vmem:[%s1138_s3 + $0x20] sm:$0xff]  ;;  %v200_v60 = vld [vmem:[%s1138_s3 + $0x28] sm:$0xff] }
  0x89   :  { %v127_v22 = vadd.f32 %v119_v19, %v78_v18  ;;  %v75_v35 = vmul.f32 %v990_v51, %v41_v20 }
  0x8a   :  { %764 = vtanh.f32 %v186_v61 }
  0x8d   :  { %512 = vperm.xlu1 %761, %v720_v63   ;;  %633 = vperm.xlu0 %763, %v595_v0  }
  0x8e   :  { %613 = vperm.xlu2 %762, %v591_v1   ;;  %v96_v3 = vpop.permute.xlu0 %95 }
  0x8f   :  { %v172_v5 = vpop.permute.xlu1 %171  ;;  %v118_v26 = vmul.f32 %v988_v50, %v96_v3 }
  0x90   :  { %v765_v6 = vpop.eup %764  ;;  %v185_v8 = vadd.f32 %v172_v5, %v129_v4  ;;  %v36_v28 = vpop.permute.xlu2 %35 }
  0x91   :  { %285 = vmatpush.msra.mxu0 %v765_v6  ;;  %729 = vmatpush.msra.mxu3 %v765_v6  ;;  %v126_v30 = vadd.f32 %v118_v26, %v77_v27  ;;  %v74_v40 = vmul.f32 %v990_v51, %v36_v28  ;;  %v195_v51 = vld [vmem:[%s1138_s3] sm:$0xff] }
  0x92   :  { %766 = vtanh.f32 %v185_v8  ;;  %v681_v28 = vld [vmem:[%s1138_s3 + $0x40] sm:$0xff] }
  0x95   :  { %623 = vperm.xlu1 %761, %v593_v11  }
  0x96   :  { %628 = vperm.xlu2 %762, %v594_v12   ;;  %v92_v13 = vpop.permute.xlu0 %91 }
  0x97   :  { %v167_v15 = vpop.permute.xlu1 %166  ;;  %v117_v36 = vmul.f32 %v988_v50, %v92_v13 }
  0x98   :  { %v767_v16 = vpop.eup %766  ;;  %v184_v17 = vadd.f32 %v167_v15, %v128_v14  ;;  %v147_v41 = vpop.permute.xlu2 %146 }
  0x99   :  { %286 = vmatpush.msra.mxu0 %v767_v16  ;;  %730 = vmatpush.msra.mxu3 %v767_v16  ;;  %v125_v42 = vadd.f32 %v117_v36, %v76_v37  ;;  %v686_v36 = vld [vmem:[%s1138_s3 + $0x68] sm:$0xff] }
  0x9a   :  { %768 = vtanh.f32 %v184_v17 }
  0x9e   :  { %v88_v21 = vpop.permute.xlu0 %87 }
  0x9f   :  { %v162_v23 = vpop.permute.xlu1 %161  ;;  %v116_v33 = vmul.f32 %v988_v50, %v88_v21 }
  0xa0   :  { %v769_v24 = vpop.eup %768  ;;  %v183_v25 = vadd.f32 %v162_v23, %v127_v22  ;;  %v245_v0 = vpop.permute.xlu2 %244 }
  0xa1   :  { %287 = vmatpush.msra.mxu0 %v769_v24  ;;  %731 = vmatpush.msra.mxu3 %v769_v24  ;;  %v124_v38 = vadd.f32 %v116_v33, %v75_v35  ;;  %v683_v33 = vld [vmem:[%s1138_s3 + $0x50] sm:$0xff]  ;;  %v685_v35 = vld [vmem:[%s1138_s3 + $0x60] sm:$0xff] }
  0xa2   :  { %770 = vtanh.f32 %v183_v25 }
  0xa3   :  { %v180_v46 = vadd.f32 %v147_v41, %v124_v38 }
  0xa6   :  { %v84_v29 = vpop.permute.xlu0 %83 }
  0xa7   :  { %v157_v31 = vpop.permute.xlu1 %156  ;;  %v115_v39 = vmul.f32 %v988_v50, %v84_v29  ;;  %v687_v29 = vld [vmem:[%s1138_s3 + $0x70] sm:$0xff] }
  0xa8   :  { %v771_v32 = vpop.eup %770  ;;  %v182_v34 = vadd.f32 %v157_v31, %v126_v30  ;;  %v235_v11 = vpop.permute.xlu2 %234  ;;  %v682_v31 = vld [vmem:[%s1138_s3 + $0x48] sm:$0xff] }
  0xa9   :  { %288 = vmatpush.msra.mxu0 %v771_v32  ;;  %732 = vmatpush.msra.mxu3 %v771_v32  ;;  %v123_v48 = vadd.f32 %v115_v39, %v74_v40  ;;  %v688_v32 = vld [vmem:[%s1138_s3 + $0x78] sm:$0xff] }
  0xaa   :  { %772 = vtanh.f32 %v182_v34  ;;  %v684_v34 = vld [vmem:[%s1138_s3 + $0x58] sm:$0xff] }
  0xaf   :  { %v152_v43 = vpop.permute.xlu1 %151  ;;  %v142_v44 = vpop.permute.xlu0 %141 }
  0xb0   :  { %v773_v45 = vpop.eup %772  ;;  %v181_v47 = vadd.f32 %v152_v43, %v125_v42  ;;  %v179_v49 = vadd.f32 %v142_v44, %v123_v48  ;;  %v220_v19 = vpop.permute.xlu2 %219 }
  0xb1   :  { %289 = vmatpush.msra.mxu0 %v773_v45  ;;  %733 = vmatpush.msra.mxu3 %v773_v45 }
  0xb2   :  { %774 = vtanh.f32 %v181_v47 }
  0xb3   :  { %776 = vtanh.f32 %v180_v46 }
  0xb4   :  { %778 = vtanh.f32 %v179_v49 }
  0xb7   :  { %v250_v1 = vpop.permute.xlu1 %249  ;;  %v230_v12 = vpop.permute.xlu0 %229 }
  0xb8   :  { %v775_v52 = vpop.eup %774  ;;  %v377_v40 = vpop.permute.xlu2 %376 }
  0xb9   :  { %290 = vmatpush.msra.mxu0 %v775_v52  ;;  %734 = vmatpush.msra.mxu3 %v775_v52  ;;  %v777_v50 = vpop.eup %776 }
  0xba   :  { %v779_v54 = vpop.eup %778 }
  0xbb   :  { %291 = vmatpush.msra.mxu0 %v777_v50  ;;  %735 = vmatpush.msra.mxu3 %v777_v50 }
  0xbd   :  { %292 = vmatpush.msra.mxu0 %v779_v54  ;;  %736 = vmatpush.msra.mxu3 %v779_v54 }
  0xbe   :  { %673 = vmatmul.msk.f32.vlgmr.msra.gmra.mxu0 %vm252_vm0, %v195_v51  ;;  %679 = vmatmul.msk.f32.vlgmr.msra.gmra.mxu3 %vm252_vm0, %v201_v53 }
  0xbf   :  { %v240_v10 = vpop.permute.xlu1 %239  ;;  %v215_v21 = vpop.permute.xlu0 %214 }
  0xc0   :  { %v362_v51 = vpop.permute.xlu2 %361 }
  0xc6   :  { %674 = vmatmul.msk.f32.gmra.mxu0 %vm252_vm0, %v196_v55  ;;  %680 = vmatmul.msk.f32.gmra.mxu3 %vm252_vm0, %v202_v56 }
  0xc7   :  { %v225_v17 = vpop.permute.xlu1 %224  ;;  %v372_v52 = vpop.permute.xlu0 %371 }
  0xce   :  { %675 = vmatmul.msk.f32.gmra.mxu0 %vm252_vm0, %v197_v57 }
  0xcf   :  { %v382_v41 = vpop.permute.xlu1 %381  ;;  %v357_v57 = vpop.permute.xlu0 %356 }
  0xd6   :  { %676 = vmatmul.msk.f32.gmra.mxu0 %vm252_vm0, %v198_v58 }
  0xd7   :  { %v367_v50 = vpop.permute.xlu1 %366 }
  0xde   :  { %677 = vmatmul.msk.f32.gmra.mxu0 %vm252_vm0, %v199_v59 }
  0xdf   :  { %v352_v59 = vpop.permute.xlu1 %351 }
  0xe6   :  { %678 = vmatmul.msk.f32.gmra.mxu0 %vm252_vm0, %v200_v60 }
 0x13b   :  { %v294_v61 = vpop.f32.mrf.mxu0 }
 0x13c   :  { %v295_v23 = vadd.f32 %v294_v61, %v215_v21  ;;  %v347_v61 = vpop.permute.xlu2 %346 }
 0x141   :  { %v312_v62 = vpop.f32.mrf.mxu3 }
 0x142   :  { %v313_v3 = vadd.f32 %v312_v62, %v245_v0 }
 0x143   :  { %v297_v63 = vpop.f32.mrf.mxu0 }
 0x144   :  { %v298_v20 = vadd.f32 %v297_v63, %v220_v19 }
 0x149   :  { %v315_v2 = vpop.f32.mrf.mxu3 }
 0x14a   :  { %v316_v4 = vadd.f32 %v315_v2, %v250_v1 }
 0x14b   :  { %v300_v5 = vpop.f32.mrf.mxu0 }
 0x14c   :  { %780 = vtanh.f32 %v316_v4  ;;  %v301_v18 = vadd.f32 %v300_v5, %v225_v17  ;;  %v705_v4 = vld [vmem:[%s1138_s3 + $0x80] sm:$0xff]  ;;  %v711_v5 = vld [vmem:[%s1138_s3 + $0xb0] sm:$0xff]  ;;  %v488_v17 = vpop.permute.xlu2 %487 }
 0x14d   :  { %782 = vtanh.f32 %v313_v3 }
 0x152   :  { %v781_v6 = vpop.eup %780 }
 0x153   :  { %v303_v7 = vpop.f32.mrf.mxu0  ;;  %416 = vmatpush.msra.mxu1 %v781_v6  ;;  %737 = vmatpush.msrb.mxu3 %v781_v6  ;;  %v783_v8 = vpop.eup %782 }
 0x154   :  { %v304_v16 = vadd.f32 %v303_v7, %v230_v12  ;;  %v706_v7 = vld [vmem:[%s1138_s3 + $0x88] sm:$0xff]  ;;  %v503_v21 = vpop.permute.xlu2 %502 }
 0x155   :  { %417 = vmatpush.msra.mxu1 %v783_v8  ;;  %738 = vmatpush.msrb.mxu3 %v783_v8  ;;  %v712_v8 = vld [vmem:[%s1138_s3 + $0xb8] sm:$0xff]  ;;  %v710_v12 = vld [vmem:[%s1138_s3 + $0xa8] sm:$0xff] }
 0x15b   :  { %v306_v9 = vpop.f32.mrf.mxu0 }
 0x15c   :  { %v307_v14 = vadd.f32 %v306_v9, %v235_v11  ;;  %v707_v9 = vld [vmem:[%s1138_s3 + $0x90] sm:$0xff]  ;;  %v709_v11 = vld [vmem:[%s1138_s3 + $0xa0] sm:$0xff] }
 0x163   :  { %v309_v13 = vpop.f32.mrf.mxu0 }
 0x164   :  { %v310_v15 = vadd.f32 %v309_v13, %v240_v10  ;;  %v708_v10 = vld [vmem:[%s1138_s3 + $0x98] sm:$0xff] }
 0x166   :  { %784 = vtanh.f32 %v310_v15 }
 0x167   :  { %786 = vtanh.f32 %v307_v14  ;;  %v478_v14 = vpop.permute.xlu0 %477 }
 0x168   :  { %788 = vtanh.f32 %v304_v16  ;;  %v483_v16 = vpop.permute.xlu1 %482 }
 0x169   :  { %790 = vtanh.f32 %v301_v18 }
 0x16a   :  { %792 = vtanh.f32 %v298_v20 }
 0x16b   :  { %794 = vtanh.f32 %v295_v23 }
 0x16c   :  { %v785_v22 = vpop.eup %784 }
 0x16d   :  { %418 = vmatpush.msra.mxu1 %v785_v22  ;;  %739 = vmatpush.msrb.mxu3 %v785_v22  ;;  %v787_v24 = vpop.eup %786 }
 0x16e   :  { %v789_v25 = vpop.eup %788 }
 0x16f   :  { %419 = vmatpush.msra.mxu1 %v787_v24  ;;  %740 = vmatpush.msrb.mxu3 %v787_v24  ;;  %v791_v26 = vpop.eup %790  ;;  %v493_v18 = vpop.permute.xlu0 %492 }
 0x170   :  { %v793_v27 = vpop.eup %792  ;;  %v498_v20 = vpop.permute.xlu1 %497 }
 0x171   :  { %420 = vmatpush.msra.mxu1 %v789_v25  ;;  %741 = vmatpush.msrb.mxu3 %v789_v25  ;;  %v795_v30 = vpop.eup %794 }
 0x173   :  { %421 = vmatpush.msra.mxu1 %v791_v26  ;;  %742 = vmatpush.msrb.mxu3 %v791_v26 }
 0x175   :  { %422 = vmatpush.msra.mxu1 %v793_v27  ;;  %743 = vmatpush.msrb.mxu3 %v793_v27 }
 0x177   :  { %423 = vmatpush.msra.mxu1 %v795_v30  ;;  %744 = vmatpush.msrb.mxu3 %v795_v30  ;;  %v599_v22 = vpop.permute.xlu0 %598 }
 0x178   :  { %697 = vmatmul.msk.f32.vlgmr.msra.gmra.mxu1 %vm252_vm0, %v681_v28  ;;  %703 = vmatmul.msk.f32.vlgmr.msrb.gmra.mxu3 %vm252_vm0, %v687_v29  ;;  %v604_v27 = vpop.permute.xlu1 %603  ;;  %v508_v29 = vpop.permute.xlu2 %507 }
 0x180   :  { %698 = vmatmul.msk.f32.gmra.mxu1 %vm252_vm0, %v682_v31  ;;  %704 = vmatmul.msk.f32.gmra.mxu3 %vm252_vm0, %v688_v32  ;;  %v609_v32 = vpop.permute.xlu0 %608 }
 0x188   :  { %699 = vmatmul.msk.f32.gmra.mxu1 %vm252_vm0, %v683_v33 }
 0x190   :  { %700 = vmatmul.msk.f32.gmra.mxu1 %vm252_vm0, %v684_v34 }
 0x198   :  { %701 = vmatmul.msk.f32.gmra.mxu1 %vm252_vm0, %v685_v35 }
 0x1a0   :  { %702 = vmatmul.msk.f32.gmra.mxu1 %vm252_vm0, %v686_v36 }
 0x1f5   :  { %v425_v37 = vpop.f32.mrf.mxu1 }
 0x1f6   :  { %v426_v63 = vadd.f32 %v425_v37, %v347_v61 }
 0x1fb   :  { %v443_v38 = vpop.f32.mrf.mxu3 }
 0x1fc   :  { %v444_v43 = vadd.f32 %v443_v38, %v377_v40 }
 0x1fd   :  { %v428_v39 = vpop.f32.mrf.mxu1 }
 0x1fe   :  { %v429_v60 = vadd.f32 %v428_v39, %v352_v59  ;;  %v513_v39 = vpop.permute.xlu1 %512 }
 0x203   :  { %v446_v42 = vpop.f32.mrf.mxu3 }
 0x204   :  { %v447_v44 = vadd.f32 %v446_v42, %v382_v41 }
 0x205   :  { %v431_v45 = vpop.f32.mrf.mxu1 }
 0x206   :  { %796 = vtanh.f32 %v447_v44  ;;  %v432_v58 = vadd.f32 %v431_v45, %v357_v57  ;;  %v624_v57 = vpop.permute.xlu1 %623 }
 0x207   :  { %798 = vtanh.f32 %v444_v43  ;;  %v614_v43 = vpop.permute.xlu2 %613 }
 0x20c   :  { %v797_v46 = vpop.eup %796 }
 0x20d   :  { %v434_v47 = vpop.f32.mrf.mxu1  ;;  %547 = vmatpush.msra.mxu2 %v797_v46  ;;  %745 = vmatpush.msra.mxu3 %v797_v46  ;;  %v799_v48 = vpop.eup %798 }
 0x20e   :  { %v435_v56 = vadd.f32 %v434_v47, %v362_v51 }
 0x20f   :  { %548 = vmatpush.msra.mxu2 %v799_v48  ;;  %746 = vmatpush.msra.mxu3 %v799_v48  ;;  %v629_v61 = vpop.permute.xlu2 %628 }
 0x215   :  { %v437_v49 = vpop.f32.mrf.mxu1 }
 0x216   :  { %v438_v54 = vadd.f32 %v437_v49, %v367_v50  ;;  %v619_v49 = vpop.permute.xlu0 %618 }
 0x21d   :  { %v440_v53 = vpop.f32.mrf.mxu1 }
 0x21e   :  { %v441_v55 = vadd.f32 %v440_v53, %v372_v52 }
 0x220   :  { %800 = vtanh.f32 %v441_v55 }
 0x221   :  { %802 = vtanh.f32 %v438_v54 }
 0x222   :  { %804 = vtanh.f32 %v435_v56 }
 0x223   :  { %806 = vtanh.f32 %v432_v58 }
 0x224   :  { %808 = vtanh.f32 %v429_v60 }
 0x225   :  { %810 = vtanh.f32 %v426_v63 }
 0x226   :  { %v801_v62 = vpop.eup %800 }
 0x227   :  { %549 = vmatpush.msra.mxu2 %v801_v62  ;;  %747 = vmatpush.msra.mxu3 %v801_v62  ;;  %v803_v0 = vpop.eup %802 }
 0x228   :  { %v805_v1 = vpop.eup %804 }
 0x229   :  { %550 = vmatpush.msra.mxu2 %v803_v0  ;;  %748 = vmatpush.msra.mxu3 %v803_v0  ;;  %v807_v2 = vpop.eup %806  ;;  %v634_v0 = vpop.permute.xlu0 %633 }
 0x22a   :  { %v809_v3 = vpop.eup %808 }
 0x22b   :  { %551 = vmatpush.msra.mxu2 %v805_v1  ;;  %749 = vmatpush.msra.mxu3 %v805_v1  ;;  %v811_v6 = vpop.eup %810 }
 0x22d   :  { %552 = vmatpush.msra.mxu2 %v807_v2  ;;  %750 = vmatpush.msra.mxu3 %v807_v2 }
 0x22f   :  { %553 = vmatpush.msra.mxu2 %v809_v3  ;;  %751 = vmatpush.msra.mxu3 %v809_v3 }
 0x231   :  { %554 = vmatpush.msra.mxu2 %v811_v6  ;;  %752 = vmatpush.msra.mxu3 %v811_v6 }
 0x232   :  { %721 = vmatmul.msk.f32.vlgmr.msra.gmra.mxu2 %vm252_vm0, %v705_v4  ;;  %727 = vmatmul.msk.f32.vlgmr.msra.gmra.mxu3 %vm252_vm0, %v711_v5 }
 0x23a   :  { %722 = vmatmul.msk.f32.gmra.mxu2 %vm252_vm0, %v706_v7  ;;  %728 = vmatmul.msk.f32.gmra.mxu3 %vm252_vm0, %v712_v8 }
 0x242   :  { %723 = vmatmul.msk.f32.gmra.mxu2 %vm252_vm0, %v707_v9  ;;  %v658_v9 = vstv %s1139_s5 }
 0x24a   :  { %724 = vmatmul.msk.f32.gmra.mxu2 %vm252_vm0, %v708_v10 }
 0x252   :  { %725 = vmatmul.msk.f32.gmra.mxu2 %vm252_vm0, %v709_v11 }
 0x25a   :  { %726 = vmatmul.msk.f32.gmra.mxu2 %vm252_vm0, %v710_v12 }
 0x2b5   :  { %v556_v13 = vpop.f32.mrf.mxu2  ;;  %v574_v26 = vpop.f32.mrf.mxu3 }
 0x2b6   :  { %v557_v25 = vadd.f32 %v556_v13, %v478_v14  ;;  %v575_v36 = vadd.f32 %v574_v26, %v508_v29 }
 0x2bd   :  { %v559_v15 = vpop.f32.mrf.mxu2  ;;  %v577_v37 = vpop.f32.mrf.mxu3 }
 0x2be   :  { %v560_v24 = vadd.f32 %v559_v15, %v483_v16  ;;  %v578_v44 = vadd.f32 %v577_v37, %v513_v39 }
 0x2c0   :  { %812 = vtanh.f32 %v560_v24 }
 0x2c1   :  { %814 = vtanh.f32 %v557_v25 }
 0x2c5   :  { %v562_v19 = vpop.f32.mrf.mxu2 }
 0x2c6   :  { %v563_v28 = vadd.f32 %v562_v19, %v488_v17  ;;  %v813_v34 = vpop.eup %812 }
 0x2c7   :  { %v815_v35 = vpop.eup %814  ;;  %v637_v40 = vmul.f32 %v813_v34, %v604_v27 }
 0x2c8   :  { %816 = vtanh.f32 %v563_v28  ;;  %v636_v46 = vmul.f32 %v815_v35, %v599_v22 }
 0x2ca   :  { %v644_v52 = vadd.f32 %v637_v40, %v636_v46 }
 0x2cd   :  { %v565_v23 = vpop.f32.mrf.mxu2 }
 0x2ce   :  { %v566_v30 = vadd.f32 %v565_v23, %v493_v18  ;;  %v817_v38 = vpop.eup %816 }
 0x2cf   :  { %v638_v47 = vmul.f32 %v817_v38, %v609_v32 }
 0x2d0   :  { %818 = vtanh.f32 %v566_v30 }
 0x2d1   :  { %v645_v51 = vadd.f32 %v644_v52, %v638_v47 }
 0x2d5   :  { %v568_v31 = vpop.f32.mrf.mxu2 }
 0x2d6   :  { %v569_v33 = vadd.f32 %v568_v31, %v498_v20  ;;  %v819_v42 = vpop.eup %818 }
 0x2d7   :  { %v639_v50 = vmul.f32 %v819_v42, %v614_v43 }
 0x2d8   :  { %820 = vtanh.f32 %v569_v33 }
 0x2d9   :  { %822 = vtanh.f32 %v575_v36  ;;  %v646_v55 = vadd.f32 %v645_v51, %v639_v50 }
 0x2dd   :  { %v571_v41 = vpop.f32.mrf.mxu2 }
 0x2de   :  { %v572_v45 = vadd.f32 %v571_v41, %v503_v21  ;;  %v821_v48 = vpop.eup %820 }
 0x2df   :  { %v640_v53 = vmul.f32 %v821_v48, %v619_v49  ;;  %v823_v54 = vpop.eup %822 }
 0x2e0   :  { %824 = vtanh.f32 %v572_v45  ;;  %v642_v62 = vmul.f32 %v823_v54, %v629_v61 }
 0x2e1   :  { %826 = vtanh.f32 %v578_v44  ;;  %v647_v58 = vadd.f32 %v646_v55, %v640_v53 }
 0x2e6   :  { %v825_v56 = vpop.eup %824 }
 0x2e7   :  { %v641_v59 = vmul.f32 %v825_v56, %v624_v57  ;;  %v827_v60 = vpop.eup %826 }
 0x2e8   :  { %v643_v1 = vmul.f32 %v827_v60, %v634_v0 }
 0x2e9   :  { %v648_v63 = vadd.f32 %v647_v58, %v641_v59 }
 0x2eb   :  { %v649_v2 = vadd.f32 %v648_v63, %v642_v62 }
 0x2ed   :  { %v650_v3 = vadd.f32 %v649_v2, %v643_v1 }
 0x2ef   :  { %v651_v4 = vrot.slane %v650_v3, 4 }
 0x2f1   :  { %v652_v5 = vadd.f32 %v651_v4, %v650_v3 }
 0x2f3   :  { %v653_v6 = vrot.slane %v652_v5, 2 }
 0x2f5   :  { %v654_v7 = vadd.f32 %v653_v6, %v652_v5 }
 0x2f7   :  { %v655_v8 = vrot.slane %v654_v7, 1 }
 0x2f9   :  { %v656_v10 = vadd.f32 %v655_v8, %v654_v7 }
 0x2fb   :  { %v659_v11 = vadd.f32 %v658_v9, %v656_v10 }
 0x2fd   :  { %660 = vst [vmem:[%s1140_s6] sm:$0x1] %v659_v11 }

</bundles_post_ra>
